<compile_context>
chip_gen: v7x
topology: tpu7x:2x2x1
jax: 0.10.0
libtpu: 0.0.40
codegen_flags: <defaults>
</compile_context>

<pallas_src>
import functools

import jax
import jax.numpy as jnp
from jax.experimental import pallas as pl
from jax.experimental.pallas import tpu as pltpu


def _vcl_kernel(a_ref, b_ref, beta_ref, loss_ref, beta_out_ref, acc_ref,
                *, sample_size, num_features):
    """One feature tile of the VCL loss.

    a_ref, b_ref : (S, TILE_F) row windows of the input (slices[0], slices[-2])
    beta_ref     : (1, TILE_F) vcl_beta tile
    loss_ref     : (1,) scalar loss output in SMEM (written on the last tile)
    beta_out_ref : (1, TILE_F) clamped beta tile (aliases the beta input)
    acc_ref      : (1,) SMEM scratch, running sum of residuals across tiles
    """
    i = pl.program_id(0)

    @pl.when(i == 0)
    def _init():
        acc_ref[0] = 0.0

    a = a_ref[...].astype(jnp.float32)                            # (S, TF)
    b = b_ref[...].astype(jnp.float32)                            # (S, TF)
    beta = jnp.maximum(beta_ref[...].astype(jnp.float32), 0.001)  # clamp_(min=0.001)
    beta_out_ref[...] = beta.astype(beta_out_ref.dtype)

    inv_sm1 = 1.0 / (sample_size - 1)                 # unbiased (torch default)

    # Two-pass variance (kept two-pass on purpose: S is tiny, and the fused
    # sum_sq - S*mean^2 form risks cancellation).
    mean_a = jnp.mean(a, axis=0, keepdims=True)                   # (1, TF)
    var_a = jnp.abs(jnp.sum((a - mean_a) ** 2, axis=0, keepdims=True) * inv_sm1)
    mean_b = jnp.mean(b, axis=0, keepdims=True)
    var_b = jnp.abs(jnp.sum((b - mean_b) ** 2, axis=0, keepdims=True) * inv_sm1)

    # Divide -> EUP approximate reciprocal + VPU multiply.
    resid = (1.0 - var_a * pl.reciprocal(var_b + beta, approx=True)) ** 2
    acc_ref[0] += jnp.sum(resid)

    @pl.when(i == pl.num_programs(0) - 1)
    def _finalize():
        loss_ref[0] = acc_ref[0] * (1.0 / num_features)


def _choose_tile_f(f, sample_size):
    """Feature-tile width.

    Prefer a single full-F block (S is tiny, so even large F fits VMEM with
    room to spare); only tile when the double-buffered working set would
    exceed ~8 MiB, using the largest multiple-of-128 divisor of F under the
    cap.
    """
    # Per-feature bytes per grid step: a + b rows, beta in + beta out tiles,
    # all f32, double-buffered by the pipeline.
    per_feat_bytes = (2 * sample_size + 2) * 4 * 2
    cap = max(128, (8 * 1024 * 1024) // per_feat_bytes)
    if f <= cap:
        return f                                      # single block, grid=(1,)
    t = (cap // 128) * 128
    while t >= 128:
        if f % t == 0:
            return t
        t -= 128
    return f  # no aligned divisor: fall back to one full-F block


@functools.partial(jax.jit, static_argnames=("sample_size", "start_b", "tile_f"))
def _vcl_loss(x, vcl_beta, *, sample_size, start_b, tile_f=None):
    n, f = x.shape
    s = sample_size

    # Static row-window slices: the kernel only ever sees 2*S rows.
    a = jax.lax.slice_in_dim(x, 0, s, axis=0)                     # slices[0]
    b = jax.lax.slice_in_dim(x, start_b, start_b + s, axis=0)     # slices[-2]
    beta2d = vcl_beta.astype(jnp.float32).reshape(1, f)

    if tile_f is None:
        tile_f = _choose_tile_f(f, s)
    assert f % tile_f == 0, (f, tile_f)
    grid = (f // tile_f,)

    kernel = functools.partial(_vcl_kernel, sample_size=s, num_features=f)

    loss, beta_clamped = pl.pallas_call(
        kernel,
        out_shape=(
            jax.ShapeDtypeStruct((1,), jnp.float32),      # scalar loss (SMEM)
            jax.ShapeDtypeStruct((1, f), jnp.float32),    # clamped beta
        ),
        grid=grid,
        in_specs=[
            pl.BlockSpec((s, tile_f), lambda i: (0, i)),  # slices[0] tile
            pl.BlockSpec((s, tile_f), lambda i: (0, i)),  # slices[-2] tile
            pl.BlockSpec((1, tile_f), lambda i: (0, i)),  # beta tile
        ],
        out_specs=(
            pl.BlockSpec(memory_space=pltpu.SMEM),        # scalar loss
            pl.BlockSpec((1, tile_f), lambda i: (0, i)),  # clamped beta tile
        ),
        scratch_shapes=[pltpu.SMEM((1,), jnp.float32)],   # running residual sum
        input_output_aliases={2: 1},                      # beta -> clamped beta
        compiler_params=pltpu.CompilerParams(
            dimension_semantics=("arbitrary",),
            vmem_limit_bytes=64 * 1024 * 1024),
    )(a, b, beta2d)

    return loss[0], beta_clamped.reshape(f)


def vcl_forward(x, vcl_beta, *, sample_size=5, tile_f=None):
    """Functional equivalent of VCL.forward.

    Returns (output, extra_loss, new_vcl_beta):
      output       : x, unchanged (the module is an identity on its input)
      extra_loss   : scalar f32 (or None when the batch condition is not met)
      new_vcl_beta : the (possibly clamped) parameter, shape (F,)
    """
    n, f = x.shape
    if n <= sample_size * 2:
        # Condition is a static shape check, resolved in Python.
        return x, None, vcl_beta

    # torch.split(x, S): only the final slice may be partial, so slices[-2]
    # always starts at (ceil(N/S) - 2) * S and has S rows whenever N > 2S.
    num_slices = -(-n // sample_size)                 # ceil(N / S)
    start_b = (num_slices - 2) * sample_size

    loss, new_beta = _vcl_loss(x, vcl_beta, sample_size=sample_size,
                               start_b=start_b, tile_f=tile_f)
    # TODO(synk): the torch NaN-divergence `raise` is host-side control flow;
    # not reproduced inside the kernel.
    return x, loss, new_beta


def _reference(x, vcl_beta, sample_size=5):
    """Pure-JAX reference of the torch forward (for verification)."""
    n, f = x.shape
    s = sample_size
    num_slices = -(-n // s)
    start_b = (num_slices - 2) * s
    beta = jnp.maximum(vcl_beta, 0.001)
    a = x[0:s]
    b = x[start_b:start_b + s]
    var_a = jnp.abs(jnp.var(a, axis=0, ddof=1))
    var_b = jnp.abs(jnp.var(b, axis=0, ddof=1))
    loss = jnp.mean((1.0 - var_a / (var_b + beta)) ** 2)
    return loss, beta


def _check_case(key, n, f, sample_size, tile_f=None):
    x = jax.random.normal(key, (n, f), dtype=jnp.float32)
    vcl_beta = jnp.ones((f,), dtype=jnp.float32)      # reset_weights(): fill 1

    # Reference computed first (kernel aliases its beta intermediate).
    ref_loss, ref_beta = _reference(x, vcl_beta, sample_size)

    out, extra_loss, new_beta = vcl_forward(x, vcl_beta,
                                            sample_size=sample_size,
                                            tile_f=tile_f)
    jax.block_until_ready((out, extra_loss, new_beta))

    assert jnp.allclose(out, x), "output must pass through unchanged"
    if n <= 2 * sample_size:
        assert extra_loss is None
        assert jnp.allclose(new_beta, vcl_beta)
        return
    # rtol accounts for the EUP approximate reciprocal (approx=True).
    assert jnp.allclose(extra_loss, ref_loss, rtol=1e-3, atol=1e-6), (
        extra_loss, ref_loss)
    assert jnp.allclose(new_beta, ref_beta), (new_beta, ref_beta)


if __name__ == "__main__":
    key = jax.random.PRNGKey(0)
    k0, k1, k2, k3, k4 = jax.random.split(key, 5)

    SAMPLE_SIZE = 5
    # Default path: full-F single block (grid=(1,)).
    _check_case(k0, n=16, f=384, sample_size=SAMPLE_SIZE)
    # Forced feature tiling: exercises the multi-tile SMEM accumulation path.
    _check_case(k1, n=16, f=384, sample_size=SAMPLE_SIZE, tile_f=128)
    # Small F, full-F block.
    _check_case(k2, n=16, f=32, sample_size=SAMPLE_SIZE)
    # N not a multiple of S (partial last split slice).
    _check_case(k3, n=12, f=256, sample_size=SAMPLE_SIZE)
    # N <= 2S branch (no loss, beta untouched).
    _check_case(k4, n=8, f=64, sample_size=SAMPLE_SIZE)

    print("KERNEL_OK")
</pallas_src>

<mosaic_0001>
module attributes {stable_mosaic.version = 11 : i64} {
  func.func @_vcl_kernel(%arg0: i32, %arg1: memref<5x384xf32, #tpu.memory_space<vmem>>, %arg2: memref<5x384xf32, #tpu.memory_space<vmem>>, %arg3: memref<1x384xf32, #tpu.memory_space<vmem>>, %arg4: memref<1xf32, #tpu.memory_space<smem>>, %arg5: memref<1x384xf32, #tpu.memory_space<vmem>>, %arg6: memref<1xf32, #tpu.memory_space<smem>>) attributes {dimension_semantics = [#tpu.dimension_semantics<arbitrary>], iteration_bounds = array<i64: 1>, scalar_prefetch = 0 : i64, scratch_operands = 1 : i64, tpu.core_type = #tpu.core_type<tc>, window_params = [{transform_indices = @transform_0, window_bounds = array<i64: 5, 384>}, {transform_indices = @transform_1, window_bounds = array<i64: 5, 384>}, {transform_indices = @transform_2, window_bounds = array<i64: 1, 384>}, {transform_indices = @transform_3, window_bounds = array<i64: 1>}, {transform_indices = @transform_4, window_bounds = array<i64: 1, 384>}]} {
    %c0_i32 = arith.constant 0 : i32
    %0 = arith.cmpi eq, %arg0, %c0_i32 : i32
    %1 = arith.extui %0 : i1 to i32
    %c0_i32_0 = arith.constant 0 : i32
    %2 = arith.cmpi ne, %1, %c0_i32_0 : i32
    scf.if %2 {
      %cst_22 = arith.constant 0.000000e+00 : f32
      %c0_23 = arith.constant 0 : index
      %49 = memref.load %arg6[%c0_23] : memref<1xf32, #tpu.memory_space<smem>>
      memref.store %cst_22, %arg6[%c0_23] : memref<1xf32, #tpu.memory_space<smem>>
    } else {
    }
    %c0 = arith.constant 0 : index
    %c0_1 = arith.constant 0 : index
    %3 = vector.load %arg1[%c0, %c0_1] : memref<5x384xf32, #tpu.memory_space<vmem>>, vector<5x384xf32>
    %c0_2 = arith.constant 0 : index
    %c0_3 = arith.constant 0 : index
    %4 = vector.load %arg2[%c0_2, %c0_3] : memref<5x384xf32, #tpu.memory_space<vmem>>, vector<5x384xf32>
    %c0_4 = arith.constant 0 : index
    %c0_5 = arith.constant 0 : index
    %5 = vector.load %arg3[%c0_4, %c0_5] : memref<1x384xf32, #tpu.memory_space<vmem>>, vector<1x384xf32>
    %cst = arith.constant 1.000000e-03 : f32
    %6 = vector.broadcast %cst : f32 to vector<1x384xf32>
    %7 = arith.maximumf %5, %6 : vector<1x384xf32>
    %c0_6 = arith.constant 0 : index
    %c0_7 = arith.constant 0 : index
    %8 = vector.load %arg5[%c0_6, %c0_7] : memref<1x384xf32, #tpu.memory_space<vmem>>, vector<1x384xf32>
    tpu.vector_store %arg5[%c0_6, %c0_7], %7 {strides = array<i32>} : memref<1x384xf32, #tpu.memory_space<vmem>>, vector<1x384xf32>,
    %cst_8 = arith.constant dense<0.000000e+00> : vector<384xf32>
    %9 = vector.multi_reduction <add>, %3, %cst_8 [0] : vector<5x384xf32> to vector<384xf32>
    %10 = vector.shape_cast %9 : vector<384xf32> to vector<1x384xf32>
    %cst_9 = arith.constant 5.000000e+00 : f32
    %11 = vector.broadcast %cst_9 : f32 to vector<1x384xf32>
    %12 = arith.divf %10, %11 : vector<1x384xf32>
    %13 = vector.broadcast %12 : vector<1x384xf32> to vector<5x384xf32>
    %14 = arith.subf %3, %13 : vector<5x384xf32>
    %15 = arith.mulf %14, %14 : vector<5x384xf32>
    %cst_10 = arith.constant dense<0.000000e+00> : vector<384xf32>
    %16 = vector.multi_reduction <add>, %15, %cst_10 [0] : vector<5x384xf32> to vector<384xf32>
    %17 = vector.shape_cast %16 : vector<384xf32> to vector<1x384xf32>
    %cst_11 = arith.constant 2.500000e-01 : f32
    %18 = vector.broadcast %cst_11 : f32 to vector<1x384xf32>
    %19 = arith.mulf %17, %18 : vector<1x384xf32>
    %20 = math.absf %19 : vector<1x384xf32>
    %cst_12 = arith.constant dense<0.000000e+00> : vector<384xf32>
    %21 = vector.multi_reduction <add>, %4, %cst_12 [0] : vector<5x384xf32> to vector<384xf32>
    %22 = vector.shape_cast %21 : vector<384xf32> to vector<1x384xf32>
    %cst_13 = arith.constant 5.000000e+00 : f32
    %23 = vector.broadcast %cst_13 : f32 to vector<1x384xf32>
    %24 = arith.divf %22, %23 : vector<1x384xf32>
    %25 = vector.broadcast %24 : vector<1x384xf32> to vector<5x384xf32>
    %26 = arith.subf %4, %25 : vector<5x384xf32>
    %27 = arith.mulf %26, %26 : vector<5x384xf32>
    %cst_14 = arith.constant dense<0.000000e+00> : vector<384xf32>
    %28 = vector.multi_reduction <add>, %27, %cst_14 [0] : vector<5x384xf32> to vector<384xf32>
    %29 = vector.shape_cast %28 : vector<384xf32> to vector<1x384xf32>
    %cst_15 = arith.constant 2.500000e-01 : f32
    %30 = vector.broadcast %cst_15 : f32 to vector<1x384xf32>
    %31 = arith.mulf %29, %30 : vector<1x384xf32>
    %32 = math.absf %31 : vector<1x384xf32>
    %33 = arith.addf %32, %7 : vector<1x384xf32>
    %34 = tpu.reciprocal %33 {approx = true} : vector<1x384xf32> -> vector<1x384xf32>
    %35 = arith.mulf %20, %34 : vector<1x384xf32>
    %cst_16 = arith.constant 1.000000e+00 : f32
    %36 = vector.broadcast %cst_16 : f32 to vector<1x384xf32>
    %37 = arith.subf %36, %35 : vector<1x384xf32>
    %38 = arith.mulf %37, %37 : vector<1x384xf32>
    %c0_17 = arith.constant 0 : index
    %39 = memref.load %arg6[%c0_17] : memref<1xf32, #tpu.memory_space<smem>>
    %40 = vector.shape_cast %38 : vector<1x384xf32> to vector<1x1x384xf32>
    %cst_18 = arith.constant dense<0.000000e+00> : vector<1xf32>
    %41 = vector.multi_reduction <add>, %40, %cst_18 [1, 2] : vector<1x1x384xf32> to vector<1xf32>
    %42 = vector.shape_cast %41 : vector<1xf32> to vector<1x1x1xf32>
    %43 = vector.extract %42[0, 0, 0] : f32 from vector<1x1x1xf32>
    %44 = arith.addf %39, %43 : f32
    %c0_19 = arith.constant 0 : index
    %45 = memref.load %arg6[%c0_19] : memref<1xf32, #tpu.memory_space<smem>>
    memref.store %44, %arg6[%c0_19] : memref<1xf32, #tpu.memory_space<smem>>
    %c0_i32_20 = arith.constant 0 : i32
    %46 = arith.cmpi eq, %arg0, %c0_i32_20 : i32
    %47 = arith.extui %46 : i1 to i32
    %c0_i32_21 = arith.constant 0 : i32
    %48 = arith.cmpi ne, %47, %c0_i32_21 : i32
    scf.if %48 {
      %c0_22 = arith.constant 0 : index
      %49 = memref.load %arg6[%c0_22] : memref<1xf32, #tpu.memory_space<smem>>
      %cst_23 = arith.constant 0.00260416674 : f32
      %50 = arith.mulf %49, %cst_23 : f32
      %c0_24 = arith.constant 0 : index
      %51 = memref.load %arg4[%c0_24] : memref<1xf32, #tpu.memory_space<smem>>
      memref.store %50, %arg4[%c0_24] : memref<1xf32, #tpu.memory_space<smem>>
    } else {
    }
    return
  }
  func.func @transform_0(%arg0: i32) -> (i32, i32) {
    %c0_i32 = arith.constant 0 : i32
    %c0_i32_0 = arith.constant 0 : i32
    return %c0_i32, %arg0 : i32, i32
  }
  func.func @transform_1(%arg0: i32) -> (i32, i32) {
    %c0_i32 = arith.constant 0 : i32
    %c0_i32_0 = arith.constant 0 : i32
    return %c0_i32, %arg0 : i32, i32
  }
  func.func @transform_2(%arg0: i32) -> (i32, i32) {
    %c0_i32 = arith.constant 0 : i32
    %c0_i32_0 = arith.constant 0 : i32
    return %c0_i32, %arg0 : i32, i32
  }
  func.func @transform_3(%arg0: i32) -> i32 {
    %c0_i32 = arith.constant 0 : i32
    %c0_i32_0 = arith.constant 0 : i32
    return %c0_i32 : i32
  }
  func.func @transform_4(%arg0: i32) -> (i32, i32) {
    %c0_i32 = arith.constant 0 : i32
    %c0_i32_0 = arith.constant 0 : i32
    return %c0_i32, %arg0 : i32, i32
  }
}

</mosaic_0001>

<bundles_post_ra>
// kernel: _vcl_loss.1
= control target key start
LH: loop header
LB: loop body
LE: loop exit
PB: predicated region body
PF: predicated region fallthrough
CT: control target
= control target key end

     0   :  { %10 = vsyncpa [#allocation4], 0  ;;  %s503_s0 = inlined_call_operand.hbm [shape: f32[5,384], index: 0, kind: input, shape index: {}]   ;;  %s504_s1 = inlined_call_operand.hbm [shape: f32[5,384], index: 1, kind: input, shape index: {}]   ;;  %s505_s2 = inlined_call_operand.hbm [shape: f32[1,384], index: 2, kind: input, shape index: {}, may-alias: {2,4}]   ;;  %s506_s3 = inlined_call_operand.hbm [shape: f32[1], index: 3, kind: output, shape index: {0}]   ;;  %s507_s4 = inlined_call_operand.hbm [shape: f32[1,384], index: 4, kind: output, shape index: {1}, may-alias: {2,4}]  }
   0x1   :  { %11 = vsyncpa [#allocation8], 0 }
   0x2   :  { %12 = vsyncpa [#allocation6], 0 }
   0x3   :  { %13 = vsyncpa [#allocation5], 0  ;;  %s393_s15 = smov [#allocation7]   ;;  %s394_s17 = smov [#allocation3]  }
   0x4   :  { %s30_s16 = sshll.u32 %s393_s15, 4  ;;  %s20_s18 = sshll.u32 %s394_s17, 4  ;;  %s31_s16 = int_to_ptr.vmem [resolvable:$true] %s30_s16  ;;  %s21_s18 = int_to_ptr.vmem [resolvable:$true] %s20_s18 }
   0x5   :  { %s287_s21 = scalar_lea.hbm %s504_s1, 384 }
   0x6   :  { %p288_p0 = scmp.ne.s32.totalorder %s504_s1, %s287_s21  ;;  %p291_p1 = scmp.lt.u32.totalorder %s287_s21, %s504_s1 }
   0x8   :  { %p293_p2 = pnand %p291_p1, %p288_p0 }
   0xa   :  { %296 = shalt.err (!%p293_p2)
}
   0xb   :  { %s297_s26 = scalar_lea.vmem %s31_s16, 384  ;;  %p302_p4 = scmp.lt.s32.totalorder %s31_s16, %s31_s16 }
   0xc   :  { %p298_p3 = scmp.ne.s32.totalorder %s31_s16, %s297_s26  ;;  %p303_p5 = scmp.lt.s32.totalorder %s297_s26, %s297_s26 }
   0xe   :  { %p304_p6 = por %p303_p5, %p302_p4 }
  0x10   :  { %p305_p7 = pnand %p304_p6, %p298_p3 }
  0x12   :  { %308 = shalt.err (!%p305_p7)
}
  0x13   :  { %33 = dma.hbm_to_vmem [thread:$0]  %s504_s1, 384, %s31_s16, [#allocation8]  }
  0x14   :  { %s309_s5 = scalar_lea.hbm %s503_s0, 384 }
  0x15   :  { %p310_p8 = scmp.ne.s32.totalorder %s503_s0, %s309_s5  ;;  %p313_p9 = scmp.lt.u32.totalorder %s309_s5, %s503_s0 }
  0x17   :  { %p315_p10 = pnand %p313_p9, %p310_p8 }
  0x19   :  { %318 = shalt.err (!%p315_p10)
}
  0x1a   :  { %s319_s10 = scalar_lea.vmem %s21_s18, 384  ;;  %p324_p12 = scmp.lt.s32.totalorder %s21_s18, %s21_s18 }
  0x1b   :  { %p320_p11 = scmp.ne.s32.totalorder %s21_s18, %s319_s10  ;;  %p325_p13 = scmp.lt.s32.totalorder %s319_s10, %s319_s10 }
  0x1d   :  { %p326_p0 = por %p325_p13, %p324_p12 }
  0x1f   :  { %p327_p1 = pnand %p326_p0, %p320_p11 }
  0x21   :  { %330 = shalt.err (!%p327_p1)
}
  0x22   :  { %23 = dma.hbm_to_vmem [thread:$0]  %s503_s0, 384, %s21_s18, [#allocation4]  }
  0x23   :  { %s395_s12 = smov [#allocation9]   ;;  %s331_s16 = scalar_lea.hbm %s505_s2, 48 }
  0x24   :  { %s40_s13 = sshll.u32 %s395_s12, 4  ;;  %p332_p2 = scmp.ne.s32.totalorder %s505_s2, %s331_s16  ;;  %s41_s13 = int_to_ptr.vmem [resolvable:$true] %s40_s13 }
  0x25   :  { %p335_p3 = scmp.lt.u32.totalorder %s331_s16, %s505_s2 }
  0x27   :  { %p337_p4 = pnand %p335_p3, %p332_p2 }
  0x29   :  { %340 = shalt.err (!%p337_p4)
}
  0x2a   :  { %s341_s22 = scalar_lea.vmem %s41_s13, 48  ;;  %s345_s0 = scalar_lea.vmem %s41_s13, 64 }
  0x2b   :  { %p342_p5 = scmp.ne.s32.totalorder %s41_s13, %s341_s22  ;;  %p346_p6 = scmp.lt.s32.totalorder %s41_s13, %s41_s13 }
  0x2c   :  { %p347_p7 = scmp.lt.s32.totalorder %s345_s0, %s341_s22 }
  0x2e   :  { %p348_p8 = por %p347_p7, %p346_p6 }
  0x30   :  { %p349_p9 = pnand %p348_p8, %p342_p5 }
  0x32   :  { %352 = shalt.err (!%p349_p9)
}
  0x33   :  { %43 = dma.hbm_to_vmem [thread:$0]  %s505_s2, 48, %s41_s13, [#allocation8]  }
  0x34   :  { %385 = dma.done.wait [#allocation4], 384  }
  0x35   :  { %386 = vsyncadd [#allocation4], 4294966912 }
  0x36   :  { %387 = dma.done.wait [#allocation8], 432  }
  0x37   :  { %388 = vsyncadd [#allocation8], 4294966864  ;;  %vm72_vm0 = vcmask 1044480   ;;  %v59_v0 = vld [vmem:[#allocation3] sm:$0x1f]  ;;  %vm220_vm1 = vcmask 1040384  }
  0x38   :  { %v60_v1 = vld [vmem:[#allocation3 + $0x8] sm:$0x1f]  ;;  %v61_v2 = vld [vmem:[#allocation3 + $0x10] sm:$0x1f]  ;;  %v62_v3 = vld [vmem:[#allocation7] sm:$0x1f] }
  0x39   :  { %v63_v4 = vld [vmem:[#allocation7 + $0x8] sm:$0x1f]  ;;  %v64_v5 = vld [vmem:[#allocation7 + $0x10] sm:$0x1f]  ;;  %v73_v6 = vsel %vm72_vm0, %v59_v0, 0.0  ;;  %v80_v7 = vsel %vm72_vm0, %v60_v1, 0.0 }
  0x3a   :  { %v87_v8 = vsel %vm72_vm0, %v61_v2, 0.0  ;;  %v131_v9 = vsel %vm72_vm0, %v62_v3, 0.0  ;;  %v74_v10 = vrot.slane %v73_v6, 4  ;;  %v81_v11 = vrot.slane %v80_v7, 4  ;;  %s396_s2 = smov [#allocation11]  }
  0x3b   :  { %v88_v12 = vrot.slane %v87_v8, 4  ;;  %v132_v13 = vrot.slane %v131_v9, 4  ;;  %v138_v14 = vsel %vm72_vm0, %v63_v4, 0.0  ;;  %v145_v15 = vsel %vm72_vm0, %v64_v5, 0.0  ;;  %s259_s24 = sshll.u32 %s396_s2, 4  ;;  %s260_s24 = int_to_ptr.vmem [resolvable:$true] %s259_s24 }
  0x3c   :  { %v75_v16 = vadd.f32 %v74_v10, %v73_v6  ;;  %v82_v17 = vadd.f32 %v81_v11, %v80_v7  ;;  %v139_v19 = vrot.slane %v138_v14, 4  ;;  %v146_v21 = vrot.slane %v145_v15, 4  ;;  %s353_s25 = scalar_lea.vmem %s260_s24, 48  ;;  %s357_s26 = scalar_lea.vmem %s260_s24, 64 }
  0x3d   :  { %v89_v18 = vadd.f32 %v88_v12, %v87_v8  ;;  %v133_v20 = vadd.f32 %v132_v13, %v131_v9  ;;  %v67_v11 = vlaneseq  ;;  %p354_p10 = scmp.ne.s32.totalorder %s260_s24, %s353_s25  ;;  %p358_p11 = scmp.lt.s32.totalorder %s260_s24, %s260_s24 }
  0x3e   :  { %v76_v22 = vrot.slane %v75_v16, 2  ;;  %v83_v23 = vrot.slane %v82_v17, 2  ;;  %v140_v25 = vadd.f32 %v139_v19, %v138_v14  ;;  %v147_v27 = vadd.f32 %v146_v21, %v145_v15  ;;  %p359_p12 = scmp.lt.s32.totalorder %s357_s26, %s353_s25 }
  0x3f   :  { %v90_v24 = vrot.slane %v89_v18, 2  ;;  %v134_v26 = vrot.slane %v133_v20, 2  ;;  %v190_v21 = vshrl.u32 %v67_v11, 7  ;;  %vm69_vm2 = vcmp.lt.s32.totalorder %v67_v11, 384 }
  0x40   :  { %v77_v28 = vadd.f32 %v76_v22, %v75_v16  ;;  %v84_v29 = vadd.f32 %v83_v23, %v82_v17  ;;  %v141_v31 = vrot.slane %v140_v25, 2  ;;  %v148_v33 = vrot.slane %v147_v27, 2  ;;  %v65_v22 = vld [vmem:[#allocation9] sm:$0x7]  ;;  %p360_p13 = por %p359_p12, %p358_p11 }
  0x41   :  { %v91_v30 = vadd.f32 %v90_v24, %v89_v18  ;;  %v135_v32 = vadd.f32 %v134_v26, %v133_v20 }
  0x42   :  { %v78_v34 = vrot.slane %v77_v28, 1  ;;  %v85_v35 = vrot.slane %v84_v29, 1  ;;  %v142_v37 = vadd.f32 %v141_v31, %v140_v25  ;;  %v149_v39 = vadd.f32 %v148_v33, %v147_v27  ;;  %p361_p0 = pnand %p360_p13, %p354_p10 }
  0x43   :  { %v92_v36 = vrot.slane %v91_v30, 1  ;;  %v136_v38 = vrot.slane %v135_v32, 1  ;;  %v191_v33 = vsub.s32 0, %v190_v21 }
  0x44   :  { %v79_v40 = vadd.f32 %v78_v34, %v77_v28  ;;  %v86_v41 = vadd.f32 %v85_v35, %v84_v29  ;;  %v143_v43 = vrot.slane %v142_v37, 1  ;;  %v150_v45 = vrot.slane %v149_v39, 1 }
  0x45   :  { %v93_v42 = vadd.f32 %v92_v36, %v91_v30  ;;  %v137_v44 = vadd.f32 %v136_v38, %v135_v32  ;;  %v472_v30 = vmax.f32 %v65_v22, 0.001  ;;  %v195_v36 = vsub.s32 1, %v190_v21 }
  0x46   :  { %v95_v46 = vmul.f32 0.2, %v79_v40  ;;  %v96_v47 = vmul.f32 0.2, %v86_v41  ;;  %v144_v49 = vadd.f32 %v143_v43, %v142_v37  ;;  %v151_v50 = vadd.f32 %v150_v45, %v149_v39 }
  0x47   :  { %v97_v48 = vmul.f32 0.2, %v93_v42  ;;  %v152_v51 = vmul.f32 0.2, %v137_v44  ;;  %v199_v39 = vsub.s32 2, %v190_v21  ;;  %v192_v44 = vrot.slane %v472_v30, %v191_v33 }
  0x48   :  { %v98_v52 = vsub.f32 %v59_v0, %v95_v46  ;;  %v99_v53 = vsub.f32 %v60_v1, %v96_v47  ;;  %v153_v55 = vmul.f32 0.2, %v144_v49  ;;  %v154_v56 = vmul.f32 0.2, %v151_v50  ;;  %71 = vst.msk [vmem:[#allocation11] sm:$0x7] %vm69_vm2, %v472_v30 }
  0x49   :  { %v100_v54 = vsub.f32 %v61_v2, %v97_v48  ;;  %v155_v57 = vsub.f32 %v62_v3, %v152_v51  ;;  %v196_v48 = vrot.slane %v472_v30, %v195_v36  ;;  %v200_v50 = vrot.slane %v472_v30, %v199_v39 }
  0x4a   :  { %v101_v58 = vmul.f32 %v98_v52, %v98_v52  ;;  %v102_v59 = vmul.f32 %v99_v53, %v99_v53  ;;  %v156_v61 = vsub.f32 %v63_v4, %v153_v55  ;;  %v157_v62 = vsub.f32 %v64_v5, %v154_v56 }
  0x4b   :  { %v103_v60 = vmul.f32 %v100_v54, %v100_v54  ;;  %v158_v63 = vmul.f32 %v155_v57, %v155_v57 }
  0x4c   :  { %v104_v6 = vsel %vm72_vm0, %v101_v58, 0.0  ;;  %v111_v7 = vsel %vm72_vm0, %v102_v59, 0.0  ;;  %v159_v9 = vmul.f32 %v156_v61, %v156_v61  ;;  %v160_v0 = vmul.f32 %v157_v62, %v157_v62 }
  0x4d   :  { %v118_v8 = vsel %vm72_vm0, %v103_v60, 0.0  ;;  %v105_v10 = vrot.slane %v104_v6, 4  ;;  %v112_v1 = vrot.slane %v111_v7, 4  ;;  %v161_v2 = vsel %vm72_vm0, %v158_v63, 0.0 }
  0x4e   :  { %v168_v3 = vsel %vm72_vm0, %v159_v9, 0.0  ;;  %v119_v12 = vrot.slane %v118_v8, 4  ;;  %v162_v13 = vrot.slane %v161_v2, 4  ;;  %v175_v5 = vsel %vm72_vm0, %v160_v0, 0.0 }
  0x4f   :  { %v169_v4 = vrot.slane %v168_v3, 4  ;;  %v106_v14 = vadd.f32 %v105_v10, %v104_v6  ;;  %v113_v16 = vadd.f32 %v112_v1, %v111_v7  ;;  %v176_v18 = vrot.slane %v175_v5, 4 }
  0x50   :  { %v163_v15 = vadd.f32 %v162_v13, %v161_v2  ;;  %v120_v19 = vadd.f32 %v119_v12, %v118_v8 }
  0x51   :  { %v170_v17 = vadd.f32 %v169_v4, %v168_v3  ;;  %v177_v24 = vadd.f32 %v176_v18, %v175_v5  ;;  %v107_v25 = vrot.slane %v106_v14, 2  ;;  %v114_v27 = vrot.slane %v113_v16, 2 }
  0x52   :  { %v164_v20 = vrot.slane %v163_v15, 2  ;;  %v121_v31 = vrot.slane %v120_v19, 2 }
  0x53   :  { %v171_v23 = vrot.slane %v170_v17, 2  ;;  %v178_v29 = vrot.slane %v177_v24, 2  ;;  %v108_v37 = vadd.f32 %v107_v25, %v106_v14  ;;  %v115_v40 = vadd.f32 %v114_v27, %v113_v16 }
  0x54   :  { %v165_v26 = vadd.f32 %v164_v20, %v163_v15  ;;  %v122_v43 = vadd.f32 %v121_v31, %v120_v19 }
  0x55   :  { %v172_v28 = vadd.f32 %v171_v23, %v170_v17  ;;  %v179_v35 = vadd.f32 %v178_v29, %v177_v24  ;;  %v109_v49 = vrot.slane %v108_v37, 1  ;;  %v116_v51 = vrot.slane %v115_v40, 1 }
  0x56   :  { %v166_v32 = vrot.slane %v165_v26, 1  ;;  %v123_v55 = vrot.slane %v122_v43, 1 }
  0x57   :  { %v173_v34 = vrot.slane %v172_v28, 1  ;;  %v180_v42 = vrot.slane %v179_v35, 1  ;;  %v110_v59 = vadd.f32 %v109_v49, %v108_v37  ;;  %v117_v60 = vadd.f32 %v116_v51, %v115_v40 }
  0x58   :  { %v167_v38 = vadd.f32 %v166_v32, %v165_v26  ;;  %v124_v62 = vadd.f32 %v123_v55, %v122_v43 }
  0x59   :  { %v174_v41 = vadd.f32 %v173_v34, %v172_v28  ;;  %v181_v45 = vadd.f32 %v180_v42, %v179_v35  ;;  %v125_v63 = vmul.f32 0.25, %v110_v59  ;;  %v126_v6 = vmul.f32 0.25, %v117_v60 }
  0x5a   :  { %v182_v46 = vmul.f32 0.25, %v167_v38  ;;  %v127_v7 = vmul.f32 0.25, %v124_v62 }
  0x5b   :  { %v183_v47 = vmul.f32 0.25, %v174_v41  ;;  %v184_v52 = vmul.f32 0.25, %v181_v45  ;;  %v128_v8 = vand.u32 2147483647, %v125_v63  ;;  %v129_v9 = vand.u32 2147483647, %v126_v6 }
  0x5c   :  { %v185_v53 = vand.u32 2147483647, %v182_v46  ;;  %v130_v10 = vand.u32 2147483647, %v127_v7 }
  0x5d   :  { %v186_v54 = vand.u32 2147483647, %v183_v47  ;;  %v187_v56 = vand.u32 2147483647, %v184_v52 }
  0x5e   :  { %v204_v57 = vadd.f32 %v192_v44, %v185_v53 }
  0x5f   :  { %v205_v58 = vadd.f32 %v196_v48, %v186_v54  ;;  %v206_v61 = vadd.f32 %v200_v50, %v187_v56 }
  0x60   :  { %281 = vrcp.f32 %v204_v57 }
  0x61   :  { %283 = vrcp.f32 %v205_v58 }
  0x62   :  { %285 = vrcp.f32 %v206_v61 }
  0x6a   :  { %v282_v0 = vpop.eup %281 }
  0x6b   :  { %v284_v1 = vpop.eup %283  ;;  %v210_v2 = vmul.f32 %v282_v0, %v128_v8 }
  0x6c   :  { %v286_v3 = vpop.eup %285  ;;  %v211_v12 = vmul.f32 %v284_v1, %v129_v9 }
  0x6d   :  { %v212_v13 = vmul.f32 %v286_v3, %v130_v10  ;;  %v213_v4 = vsub.f32 1.0, %v210_v2 }
  0x6e   :  { %v214_v5 = vsub.f32 1.0, %v211_v12 }
  0x6f   :  { %v215_v14 = vsub.f32 1.0, %v212_v13  ;;  %v216_v15 = vmul.f32 %v213_v4, %v213_v4 }
  0x70   :  { %v217_v16 = vmul.f32 %v214_v5, %v214_v5 }
  0x71   :  { %v218_v17 = vmul.f32 %v215_v14, %v215_v14  ;;  %v221_v18 = vsel %vm220_vm1, %v216_v15, 0.0 }
  0x72   :  { %v222_v19 = vsel %vm220_vm1, %v217_v16, 0.0 }
  0x73   :  { %v223_v20 = vadd.f32 %v222_v19, %v221_v18  ;;  %v224_v21 = vsel %vm220_vm1, %v218_v17, 0.0 }
  0x75   :  { %v225_v22 = vadd.f32 %v224_v21, %v223_v20 }
  0x77   :  { %226 = vadd.xlane.f32.xlu0 %v225_v22 }
  0x78   :  { %364 = shalt.err (!%p361_p0)
}
  0x79   :  { %s365_s29 = scalar_lea.hbm %s507_s4, 48 }
  0x7a   :  { %p366_p1 = scmp.ne.s32.totalorder %s507_s4, %s365_s29  ;;  %p369_p2 = scmp.lt.u32.totalorder %s365_s29, %s507_s4 }
  0x7c   :  { %p371_p3 = pnand %p369_p2, %p366_p1 }
  0x7e   :  { %374 = shalt.err (!%p371_p3)
}
  0x7f   :  { %262 = dma.vmem_to_hbm [thread:$0]  %s260_s24, 48, %s507_s4, [#allocation5]  }
  0x80   :  { %s375_s13 = scalar_lea.hbm %s506_s3, 16 }
  0x81   :  { %p376_p4 = scmp.ne.s32.totalorder %s506_s3, %s375_s13  ;;  %p379_p5 = scmp.lt.u32.totalorder %s375_s13, %s506_s3 }
  0x83   :  { %p381_p6 = pnand %p379_p5, %p376_p4 }
 0x104   :  { %v227_v11 = vpop.xlane.xlu0 %226 }
 0x105   :  { %v228_v23 = vrot.slane %v227_v11, 4 }
 0x107   :  { %v229_v24 = vadd.f32 %v228_v23, %v227_v11 }
 0x109   :  { %v230_v25 = vrot.slane %v229_v24, 2 }
 0x10b   :  { %v231_v26 = vadd.f32 %v230_v25, %v229_v24 }
 0x10d   :  { %v232_v27 = vrot.slane %v231_v26, 1 }
 0x10f   :  { %v233_v28 = vadd.f32 %v232_v27, %v231_v26 }
 0x111   :  { %274 = vpush %v233_v28 }
 0x142   :  { %s275_s10 = spop %274 }
 0x143   :  { %s242_s1 = smul.f32 0.0026041667, %s275_s10 }
 0x145   :  { %244 = sst [smem:[#allocation10]] %s242_s1 }
 0x146   :  { %384 = shalt.err (!%p381_p6)
}
 0x147   :  { %s397_s17 = smov [#allocation10]  }
 0x148   :  { %252 = dma.smem_to_hbm %s397_s17, 16, %s506_s3, [#allocation6]  }
 0x149   :  { %389 = dma.done.wait [#allocation6], 16  }
 0x14a   :  { %390 = vsyncadd [#allocation6], 4294967280 }
 0x14b   :  { %391 = dma.done.wait [#allocation5], 48  }
 0x14c   :  { %392 = vsyncadd [#allocation5], 4294967248 }
 0x14d   :  { %269 = sfence }
 0x14e   :  { %270 = vsyncpa [#allocation4], 1 }
 0x14f   :  { %271 = vsyncpa [#allocation8], 1 }
 0x150   :  { %272 = vsyncpa [#allocation5], 1 }
 0x151   :  { %273 = vsyncpa [#allocation6], 1 }

</bundles_post_ra>
